<compile_context>
chip_gen: v7x
topology: tpu7x:2x2x1
jax: 0.10.0
libtpu: 0.0.40
codegen_flags: <defaults>
</compile_context>

<pallas_src>
import functools

import jax
import jax.numpy as jnp
from jax.experimental import pallas as pl
from jax.experimental.pallas import tpu as pltpu


def _round_up(x, m):
    return (x + m - 1) // m * m


def _cdiv(a, b):
    return (a + b - 1) // b


# ---------------------------------------------------------------------------
# Kernels
# ---------------------------------------------------------------------------

def _fast_kernel(x_ref, w_ref, b_ref, o_ref):
    # x_ref: (tm, Dp) f32   w_ref: (Dp, tn) bf16   b_ref: (1, tn) f32
    # o_ref: (tm, tn) f32
    x = x_ref[...].astype(jnp.bfloat16)          # VPU cast; MXU gets bf16 operands
    acc = jnp.dot(x, w_ref[...], preferred_element_type=jnp.float32)
    o_ref[...] = (acc + b_ref[...]).astype(o_ref.dtype)


def _tiled_kernel(x_ref, w_ref, b_ref, o_ref):
    # x_ref: (tm, tk) f32   w_ref: (tk, tn) bf16   b_ref: (1, tn) f32
    # o_ref: (tm, tn) f32 -- resident across the k axis, used as accumulator.
    k = pl.program_id(2)

    @pl.when(k == 0)
    def _init():
        # Initialize the accumulator with the bias: removes the finalize add.
        o_ref[...] = jnp.broadcast_to(b_ref[...], o_ref.shape).astype(o_ref.dtype)

    o_ref[...] += jnp.dot(
        x_ref[...].astype(jnp.bfloat16), w_ref[...],
        preferred_element_type=jnp.float32)


# ---------------------------------------------------------------------------
# One-time parameter preparation (NOT part of the per-call forward)
# ---------------------------------------------------------------------------

def prepare_linear_params(weight, bias):
    """Transpose, zero-pad to 128-multiples and cast the weight to bf16 once.

    Args:
      weight: (N, D) float32 -- torch nn.Linear layout (out_features, in_features)
      bias:   (N,)  float32
    Returns:
      w_t: (Dp, Np) bfloat16   b2d: (1, Np) float32
    """
    weight = jnp.asarray(weight, dtype=jnp.float32)
    bias = jnp.asarray(bias, dtype=jnp.float32)
    n, d = weight.shape
    dp, np_ = _round_up(d, 128), _round_up(n, 128)

    w_t = weight.T
    if (dp, np_) != (d, n):
        w_t = jnp.pad(w_t, ((0, dp - d), (0, np_ - n)))
    b2d = bias.reshape(1, -1)
    if np_ != n:
        b2d = jnp.pad(b2d, ((0, 0), (0, np_ - n)))
    return w_t.astype(jnp.bfloat16), b2d


# ---------------------------------------------------------------------------
# Forward
# ---------------------------------------------------------------------------

_FAST_VMEM_BUDGET = 40 * 1024 * 1024     # conservative for v7x's 64 MiB VMEM
_VMEM_MARGIN = 4 * 1024 * 1024


def _vmem_limit(bytes_needed):
    # Explicit scoped-VMEM limit (v5e default is only 16 MiB); leave headroom
    # under v7x's 64 MiB physical VMEM.
    return int(min(max(bytes_needed + _VMEM_MARGIN, 32 * 1024 * 1024),
                   48 * 1024 * 1024))


def _fast_config(B, Dp, Np):
    """Weight-resident path config (tm, tn, vmem_bytes) or None if too big."""
    tm = B if B <= 256 else 256                 # full-dim block or multiple of 8
    ni = _cdiv(B, tm)
    # Single M tile -> split N so v7x's two TensorCores both get a parallel tile.
    if ni == 1 and Np >= 256 and Np % 256 == 0:
        tn = Np // 2
    else:
        tn = Np
    vmem = 2 * (tm * Dp * 4 + Dp * tn * 2 + tn * 4 + tm * tn * 4)
    if vmem > _FAST_VMEM_BUDGET:
        return None
    return tm, tn, vmem


def _largest_divisor(n, candidates):
    for c in candidates:
        if n % c == 0:
            return c
    return candidates[-1]


@functools.partial(jax.jit, static_argnames=("num_labels",))
def linear_classifier_forward(x, w_t, b2d, num_labels):
    """Pallas forward for LinearClassifier: x.view(B, -1) @ W.T + b.

    Args:
      x:    (B, ...) float32 -- arbitrary trailing dims, flattened like torch .view
      w_t:  (Dp, Np) bfloat16 -- from prepare_linear_params
      b2d:  (1, Np)  float32  -- from prepare_linear_params
      num_labels: static int, the true N (Np may be padded)
    Returns:
      (B, num_labels) float32
    """
    B = x.shape[0]
    x2d = x.reshape(B, -1).astype(jnp.float32)
    D = x2d.shape[1]
    Dp, Np = w_t.shape
    assert D <= Dp and num_labels <= Np

    # Only the K (feature) dim ever needs zero padding; no-op when D % 128 == 0.
    if D != Dp:
        x2d = jnp.pad(x2d, ((0, 0), (0, Dp - D)))

    cost = pl.CostEstimate(
        flops=2 * B * Dp * Np,
        transcendentals=0,
        bytes_accessed=4 * B * Dp + 2 * Dp * Np + 4 * B * Np,
    )

    fast = _fast_config(B, Dp, Np)
    if fast is not None:
        # ---------------- Weight-resident fast path ----------------
        tm, tn, vmem = fast
        grid = (_cdiv(B, tm), Np // tn)
        out_p = pl.pallas_call(
            _fast_kernel,
            out_shape=jax.ShapeDtypeStruct((B, Np), jnp.float32),
            grid_spec=pltpu.PrefetchScalarGridSpec(
                num_scalar_prefetch=0,
                grid=grid,
                in_specs=[
                    pl.BlockSpec((tm, Dp), lambda i, j: (i, 0)),    # x tile (f32)
                    pl.BlockSpec((Dp, tn), lambda i, j: (0, j)),    # W^T (bf16), resident
                    pl.BlockSpec((1, tn), lambda i, j: (0, j)),     # bias
                ],
                out_specs=pl.BlockSpec((tm, tn), lambda i, j: (i, j)),
            ),
            compiler_params=pltpu.CompilerParams(
                dimension_semantics=("parallel", "parallel"),
                vmem_limit_bytes=_vmem_limit(vmem),
            ),
            cost_estimate=cost,
        )(x2d, w_t, b2d)
    else:
        # ---------------- Tiled (M, N, K) fallback ----------------
        tm = B if B <= 512 else 512
        tn = _largest_divisor(Np, (512, 256, 128))
        tk = _largest_divisor(Dp, (2048, 1024, 512, 256, 128))
        vmem = 2 * (tm * tk * 4 + tk * tn * 2 + tn * 4 + tm * tn * 4)
        grid = (_cdiv(B, tm), Np // tn, Dp // tk)
        out_p = pl.pallas_call(
            _tiled_kernel,
            out_shape=jax.ShapeDtypeStruct((B, Np), jnp.float32),
            grid_spec=pltpu.PrefetchScalarGridSpec(
                num_scalar_prefetch=0,
                grid=grid,
                in_specs=[
                    pl.BlockSpec((tm, tk), lambda i, j, k: (i, k)),  # x tile (f32)
                    pl.BlockSpec((tk, tn), lambda i, j, k: (k, j)),  # W^T tile (bf16)
                    pl.BlockSpec((1, tn), lambda i, j, k: (0, j)),   # bias tile
                ],
                out_specs=pl.BlockSpec((tm, tn), lambda i, j, k: (i, j)),
            ),
            compiler_params=pltpu.CompilerParams(
                dimension_semantics=("parallel", "parallel", "arbitrary"),
                vmem_limit_bytes=_vmem_limit(vmem),
            ),
            cost_estimate=cost,
        )(x2d, w_t, b2d)

    return out_p[:, :num_labels]


if __name__ == "__main__":
    # Small shapes consistent with the module: frozen features (2, 4, 8)
    # flattened to dim=32, 256 labels.
    B, C, S = 2, 4, 8
    D = C * S
    N = 256

    key = jax.random.PRNGKey(0)
    kx, kw = jax.random.split(key)

    x = jax.random.normal(kx, (B, C, S), dtype=jnp.float32)

    # Deterministic init matching the module's __init__:
    #   weight ~ Normal(0, 0.01) in torch (N, D) layout, bias = 0.
    weight = 0.01 * jax.random.normal(kw, (N, D), dtype=jnp.float32)
    bias = jnp.zeros((N,), dtype=jnp.float32)

    # One-time param prep (transpose + pad + bf16 cast) — not per forward.
    w_t, b2d = prepare_linear_params(weight, bias)

    out = linear_classifier_forward(x, w_t, b2d, N)
    out = jax.block_until_ready(out)

    # Reference in plain JAX (same math as torch nn.Linear, f32).
    ref = x.reshape(B, -1) @ weight.T + bias
    assert out.shape == (B, N)
    # bf16 MXU operands with f32 accumulation -> slightly looser tolerance.
    assert jnp.allclose(out, ref, atol=2e-2, rtol=2e-2), float(
        jnp.max(jnp.abs(out - ref)))

    print("KERNEL_OK")
</pallas_src>

<mosaic_0001>
module attributes {stable_mosaic.version = 11 : i64} {
  func.func @_fast_kernel(%arg0: i32, %arg1: i32, %arg2: memref<2x128xf32, #tpu.memory_space<vmem>>, %arg3: memref<128x128xbf16, #tpu.memory_space<vmem>>, %arg4: memref<1x128xf32, #tpu.memory_space<vmem>>, %arg5: memref<2x128xf32, #tpu.memory_space<vmem>>) attributes {dimension_semantics = [#tpu.dimension_semantics<parallel>, #tpu.dimension_semantics<parallel>], iteration_bounds = array<i64: 1, 2>, scalar_prefetch = 0 : i64, scratch_operands = 0 : i64, tpu.core_type = #tpu.core_type<tc>, window_params = [{transform_indices = @transform_0, window_bounds = array<i64: 2, 128>}, {transform_indices = @transform_1, window_bounds = array<i64: 128, 128>}, {transform_indices = @transform_2, window_bounds = array<i64: 1, 128>}, {transform_indices = @transform_3, window_bounds = array<i64: 2, 128>}]} {
    %c0 = arith.constant 0 : index
    %c0_0 = arith.constant 0 : index
    %0 = vector.load %arg2[%c0, %c0_0] : memref<2x128xf32, #tpu.memory_space<vmem>>, vector<2x128xf32>
    %1 = arith.truncf %0 : vector<2x128xf32> to vector<2x128xbf16>
    %c0_1 = arith.constant 0 : index
    %c0_2 = arith.constant 0 : index
    %2 = vector.load %arg3[%c0_1, %c0_2] : memref<128x128xbf16, #tpu.memory_space<vmem>>, vector<128x128xbf16>
    %cst = arith.constant dense<0.000000e+00> : vector<2x128xf32>
    %3 = tpu.matmul %1, %2, %cst {dimension_numbers = #tpu.dot_dimension_numbers<[1], [0], [0], [1], [0, 0, 1, 1], [], []>} : vector<2x128xbf16>, vector<128x128xbf16>, vector<2x128xf32> -> vector<2x128xf32>
    %c0_3 = arith.constant 0 : index
    %c0_4 = arith.constant 0 : index
    %4 = vector.load %arg4[%c0_3, %c0_4] : memref<1x128xf32, #tpu.memory_space<vmem>>, vector<1x128xf32>
    %5 = vector.broadcast %4 : vector<1x128xf32> to vector<2x128xf32>
    %6 = arith.addf %3, %5 : vector<2x128xf32>
    %c0_5 = arith.constant 0 : index
    %c0_6 = arith.constant 0 : index
    %7 = vector.load %arg5[%c0_5, %c0_6] : memref<2x128xf32, #tpu.memory_space<vmem>>, vector<2x128xf32>
    tpu.vector_store %arg5[%c0_5, %c0_6], %6 {strides = array<i32>} : memref<2x128xf32, #tpu.memory_space<vmem>>, vector<2x128xf32>,
    return
  }
  func.func @transform_0(%arg0: i32, %arg1: i32) -> (i32, i32) {
    %c0_i32 = arith.constant 0 : i32
    %c0_i32_0 = arith.constant 0 : i32
    return %arg0, %c0_i32 : i32, i32
  }
  func.func @transform_1(%arg0: i32, %arg1: i32) -> (i32, i32) {
    %c0_i32 = arith.constant 0 : i32
    %c0_i32_0 = arith.constant 0 : i32
    return %c0_i32, %arg1 : i32, i32
  }
  func.func @transform_2(%arg0: i32, %arg1: i32) -> (i32, i32) {
    %c0_i32 = arith.constant 0 : i32
    %c0_i32_0 = arith.constant 0 : i32
    return %c0_i32, %arg1 : i32, i32
  }
  func.func @transform_3(%arg0: i32, %arg1: i32) -> (i32, i32) {
    %c0_i32 = arith.constant 0 : i32
    return %arg0, %arg1 : i32, i32
  }
}

</mosaic_0001>

<bundles_post_ra>
// kernel: linear_classifier_forward.1
= control target key start
LH: loop header
LB: loop body
LE: loop exit
PB: predicated region body
PF: predicated region fallthrough
CT: control target
= control target key end

     0   :  { %8 = vsyncpa [#allocation3], 0  ;;  %s916_s0 = inlined_call_operand.vmem [shape: f32[2,128], index: 0, kind: input, shape index: {}]   ;;  %s917_s1 = inlined_call_operand.hbm [shape: bf16[128,256], index: 1, kind: input, shape index: {}]   ;;  %s918_s2 = inlined_call_operand.vmem [shape: f32[1,256], index: 2, kind: input, shape index: {}]   ;;  %s919_s3 = inlined_call_operand.hbm [shape: f32[2,256], index: 3, kind: output, shape index: {}]  }
   0x1   :  { %10 = vsyncpa [#allocation3 + $0x1], 0 }
   0x2   :  { %11 = vsyncpa [#allocation4], 0 }
   0x3   :  { %13 = vsyncpa [#allocation4 + $0x1], 0  ;;  %s736_s12 = smov 0   ;;  %s738_s13 = smov 0  }
   0x4   :  { %s740_s14 = smov 0   ;;  %s742_s15 = smov 0  }
   0x5   :  { %s744_s16 = smov 0   ;;  %s746_s17 = smov 0  }
   0x6 LB: > { %s468_s18 = sadd.s32 4294967295, %s707_s17   ;;  %s469_s19 = sadd.s32 4294967294, %s707_s17   ;;  %s707_s17 = sphi %s746_s17, %s19_s17   ;;  %s703_s16 = sphi %s744_s16, %s933_s16   ;;  %s699_s15 = sphi %s742_s15, %s932_s15   ;;  %s695_s14 = sphi %s740_s14, %s931_s14   ;;  %s691_s13 = sphi %s738_s13, %s930_s13   ;;  %s687_s12 = sphi %s736_s12, %s929_s12  }
   0x7   : > { %s28_s20 = sadd.s32 1, %s703_s16  ;;  %s64_s21 = sadd.s32 1, %s695_s14 }
   0x8   : > { %p29_p0 = scmp.ge.s32.totalorder %s28_s20, 2  ;;  %p71_p1 = scmp.ne.s32.totalorder %s695_s14, %s691_s13 }
   0x9   : > { %p72_p2 = scmp.eq.s32.totalorder %s707_s17, 0  ;;  %p77_p3 = scmp.ne.s32.totalorder %s691_s13, %s687_s12 }
   0xa   : > { %s935_s20 = smov (%p29_p0, %s28_s20), 0  ;;  %p78_p5 = scmp.eq.s32.totalorder %s468_s18, 0 }
   0xb   : > { %p777_p4 = por %p72_p2, %p71_p1  ;;  %s61_s23 = ssub.s32 %s703_s16, %s935_s20 }
   0xc   : > { %p129_p6 = scmp.eq.s32.totalorder %s468_s18, 1  ;;  %p62_p7 = scmp.eq.s32.totalorder %s61_s23, 0 }
   0xd   : > { %p783_p8 = por %p78_p5, %p77_p3  ;;  %p135_p10 = scmp.eq.s32.totalorder %s469_s19, 1 }
   0xe   : > { %p787_p9 = por %p129_p6, %p71_p1  ;;  %p532_p13 = scmp.lt.s32.totalorder %s707_s17, 2 }
   0xf   : > { %s792_s26 = scalar_select %p62_p7, %s695_s14, %s64_s21  }
  0x10   : > { %s923_s25 = scalar_select %p787_p9, 1, 0 }
  0x11   : > { %p794_p11 = por %p135_p10, %p77_p3  ;;  %s162_s28 = sand.u32 1, %s695_s14  }
  0x12   : > { %s473_s29 = sshll.u32 %s162_s28, 6  ;;  %s474_s30 = sshll.u32 %s703_s16, 6 }
  0x13   : > { %s924_s27 = scalar_select %p794_p11, 1, 0 }
  0x14   : > { %s805_s6 = scalar_lea.hbm %s917_s1, %s474_s30  ;;  %s166_s7 = scalar_lea.vmem [#allocation2], %s473_s29 }
  0x15   : > { %s172_s8 = sshll.u32 %s166_s7, 4  ;;  %p811_p0 = pnand %p532_p13, %p777_p4  ;;  %s807_s8 = int_to_ptr.vmem [resolvable:$true] %s172_s8 }
  0x16   : > { %s815_s10 = scalar_lea.sflag [#allocation3], %s162_s28  ;;  %s595_s11 = scalar_lea.hbm %s805_s6, 1024 }
  0x17   : > { %p596_p1 = scmp.ne.s32.totalorder %s805_s6, %s595_s11  ;;  %p597_p2 = pneg %p811_p0 }
  0x18   : > { %s600_s21 = scalar_lea.hbm %s917_s1, 2048  ;;  %p601_p4 = scmp.lt.u32.totalorder %s805_s6, %s917_s1 }
  0x19   : > { %p598_p3 = pnand %p597_p2, %p596_p1  ;;  %p602_p6 = scmp.lt.u32.totalorder %s600_s21, %s595_s11 }
  0x1a   : > { %p604_p10 = scmp.lt.u32.totalorder %s595_s11, %s805_s6 }
  0x1b   : > { %p599_p5 = pneg %p598_p3  ;;  %p603_p7 = por %p602_p6, %p601_p4 }
  0x1d   : > { %p605_p13 = por %p604_p10, %p603_p7 }
  0x1f   : > { %p606_p12 = pnand %p605_p13, %p599_p5 }
  0x21   : > { %609 = shalt.err (!%p606_p12)
}
  0x22   : > { %s610_s28 = scalar_lea.vmem %s807_s8, 1024  ;;  %s709_s29 = smov [#allocation2]  }
  0x23   : > { %p611_p1 = scmp.ne.s32.totalorder %s807_s8, %s610_s28  ;;  %s615_s30 = sshll.u32 %s709_s29, 4  ;;  %s616_s30 = int_to_ptr.vmem [resolvable:$false] %s615_s30 }
  0x24   : > { %s617_s4 = scalar_lea.vmem %s616_s30, 2048  ;;  %p618_p9 = scmp.lt.s32.totalorder %s807_s8, %s616_s30 }
  0x25   : > { %p613_p3 = pnand %p611_p1, %p597_p2  ;;  %p619_p4 = scmp.lt.s32.totalorder %s617_s4, %s610_s28 }
  0x27   : > { %p614_p11 = pneg %p613_p3  ;;  %p620_p6 = por %p619_p4, %p618_p9 }
  0x29   : > { %p621_p7 = pnand %p620_p6, %p614_p11 }
  0x2b   : > { %624 = shalt.err (!%p621_p7)
}
  0x2c   : > { %s710_s5 = smov 128   ;;  %s711_s7 = smov 64  }
  0x2d   : > { %s712_s11 = smov 4   ;;  %p475_p12 = scmp.ge.s32.totalorder %s707_s17, 1 }
  0x2e   : > { %527 = dma.hbm_to_vmem [thread:$0]  (!%p811_p0), %s805_s6, 1024, %s807_s8, %s815_s10, %s710_s5, %s711_s7, %s712_s11  }
  0x2f   : > { %p186_p2 = scmp.lt.s32.totalorder %s707_s17, 3 }
  0x31   : > { %p187_p5 = pnand %p475_p12, %p186_p2 }
  0x32   : > { %s846_s18 = sand.u32 (!%p187_p5), 1, %s691_s13  }
  0x33   : > { %190 = sbr.rel (%p187_p5) target bundleno = 320 (0x140), region = 32  ;;  %s476_s19 = sshll.u32 (!%p187_p5), %s846_s18, 6 }
  0x34   : > { %s193_s21 = scalar_lea.sflag (!%p187_p5), [#allocation3], %s846_s18  ;;  %s196_s22 = scalar_lea.vmem (!%p187_p5), [#allocation2], %s476_s19 }
  0x3a   : > { %678 = dma.done.wait (%p783_p8), %s193_s21, 1024  }
  0x3b   : > { %680 = vsyncadd (%p783_p8), %s193_s21, 4294966272  ;;  %v713_v0 = vmov 0.0   ;;  %vm714_vm0 = vmmov 0   ;;  %v587_v1 = vld [vmem:[%s196_s22] sm:$0xff]   ;;  %v588_v2 = vld [vmem:[%s196_s22 + $0x8] sm:$0xff]   ;;  %p230_p8 = scmp.lt.s32.totalorder %s699_s15, 1 }
  0x3c   : > { %500 = vmatprep.subr.bf16.mxu0 %v713_v0  ;;  %516 = vmatprep.mubr.msk.bf16.mxu0 %vm714_vm0, %v713_v0  ;;  %v589_v3 = vld [vmem:[%s196_s22 + $0x10] sm:$0xff]   ;;  %v590_v4 = vld [vmem:[%s196_s22 + $0x18] sm:$0xff]   ;;  %v591_v5 = vld [vmem:[%s196_s22 + $0x20] sm:$0xff]   ;;  %s477_s9 = sshll.u32 %s846_s18, 1  ;;  %s488_s29 = sshll.u32 %s699_s15, 5 }
  0x3d   : > { %501 = vmatpush3.bf16.msra.mxu0 %v587_v1  ;;  %v592_v6 = vld [vmem:[%s196_s22 + $0x28] sm:$0xff]   ;;  %v593_v7 = vld [vmem:[%s196_s22 + $0x30] sm:$0xff]   ;;  %v594_v8 = vld [vmem:[%s196_s22 + $0x38] sm:$0xff]   ;;  %s231_s8 = scalar_select %p230_p8, %s699_s15, 1 }
  0x3e   : > { %502 = vmatprep.subr.bf16.mxu0 %v713_v0  ;;  %v234_v9 = vld [vmem:[%s916_s0] sm:$0x3]  ;;  %s225_s30 = scalar_lea.vmem [#allocation5], %s477_s9  ;;  %s867_s11 = scalar_lea.hbm %s919_s3, %s488_s29 }
  0x3f   : > { %v235_v10 = vpack.c.bf16 %v234_v9, %v234_v9  ;;  %s232_s28 = scalar_lea.vmem %s918_s2, %s231_s8  ;;  %s364_s4 = sshll.u32 %s225_s30, 4  ;;  %s869_s4 = int_to_ptr.vmem [resolvable:$true] %s364_s4 }
  0x40   : > { %v478_v11 = vld [vmem:[%s232_s28] ss:$0 sm:$0xff]  ;;  %s349_s19 = scalar_lea.sflag [#allocation4], %s846_s18  ;;  %s625_s15 = scalar_lea.vmem %s869_s4, 32 }
  0x41   : > { %503 = vmatpush3.bf16.msra.mxu0 %v588_v2  ;;  %p626_p9 = scmp.ne.s32.totalorder %s869_s4, %s625_s15  ;;  %p926_p11 = scmp.ne.s32.totalorder %s923_s25, 0 }
  0x42   : > { %504 = vmatprep.subr.bf16.mxu0 %v713_v0  ;;  %s715_s21 = smov [#allocation5]  }
  0x43   : > { %p627_p0 = pnand %p626_p9, %p926_p11  ;;  %s629_s22 = sshll.u32 %s715_s21, 4  ;;  %s630_s22 = int_to_ptr.vmem [resolvable:$false] %s629_s22 }
  0x44   : > { %s631_s24 = scalar_lea.vmem %s630_s22, 64  ;;  %p632_p13 = scmp.lt.s32.totalorder %s869_s4, %s630_s22 }
  0x45   : > { %505 = vmatpush3.bf16.msra.mxu0 %v589_v3  ;;  %p628_p10 = pneg %p627_p0  ;;  %p633_p1 = scmp.lt.s32.totalorder %s631_s24, %s625_s15 }
  0x46   : > { %506 = vmatprep.subr.bf16.mxu0 %v713_v0 }
  0x47   : > { %p634_p3 = por %p633_p1, %p632_p13 }
  0x49   : > { %507 = vmatpush3.bf16.msra.mxu0 %v590_v4  ;;  %p635_p4 = pnand %p634_p3, %p628_p10 }
  0x4a   : > { %508 = vmatprep.subr.bf16.mxu0 %v713_v0 }
  0x4d   : > { %509 = vmatpush3.bf16.msra.mxu0 %v591_v5 }
  0x4e   : > { %510 = vmatprep.subr.bf16.mxu0 %v713_v0 }
  0x51   : > { %511 = vmatpush3.bf16.msra.mxu0 %v592_v6 }
  0x52   : > { %512 = vmatprep.subr.bf16.mxu0 %v713_v0 }
  0x55   : > { %513 = vmatpush3.bf16.msra.mxu0 %v593_v7 }
  0x56   : > { %514 = vmatprep.subr.bf16.mxu0 %v713_v0 }
  0x59   : > { %515 = vmatpush3.bf16.msra.mxu0 %v594_v8 }
  0x5c   : > { %517 = vmatmul.mubr.bf16.vlgmr.msra.gmra.mrb[0].mxu0 %v235_v10 }
 0x12f   : > { %v341_v12 = vpop.f32.mrb[0].mxu0 }
 0x130   : > { %v342_v13 = vadd.f32 %v478_v11, %v341_v12  ;;  %v518_v14 = vpop.f32.mrb[1].mxu0 }
 0x131   : > { %v344_v15 = vpop.f32.mrb[2].mxu0 }
 0x132   : > { %347 = vst [vmem:[%s225_s30] sm:$0x3] %v342_v13  ;;  %v519_v16 = vpop.f32.mrb[3].mxu0 }
 0x133   : > { %638 = shalt.err (!%p635_p4)
}
 0x134   : > { %s639_s18 = scalar_lea.hbm %s867_s11, 32  ;;  %s643_s9 = scalar_lea.hbm %s919_s3, 64 }
 0x135   : > { %p640_p6 = scmp.ne.s32.totalorder %s867_s11, %s639_s18  ;;  %p644_p2 = scmp.lt.u32.totalorder %s867_s11, %s919_s3 }
 0x136   : > { %p645_p5 = scmp.lt.u32.totalorder %s643_s9, %s639_s18  ;;  %p647_p9 = scmp.lt.u32.totalorder %s639_s18, %s867_s11 }
 0x137   : > { %p641_p7 = pnand %p640_p6, %p926_p11 }
 0x138   : > { %p646_p8 = por %p645_p5, %p644_p2 }
 0x139   : > { %p642_p12 = pneg %p641_p7 }
 0x13a   : > { %p648_p0 = por %p647_p9, %p646_p8 }
 0x13c   : > { %p649_p10 = pnand %p648_p0, %p642_p12 }
 0x13e   : > { %652 = shalt.err (!%p649_p10)
}
 0x13f   : > { %522 = dma.vmem_to_hbm [thread:$0]  (%p926_p11), %s869_s4, 32, %s867_s11, %s349_s19  }
 0x140 PF: > { %s376_s28 = sand.u32 1, %s687_s12   ;;  %p927_p13 = scmp.ne.s32.totalorder %s924_s27, 0 }
 0x141   : > { %p928_p1 = scmp.ge.s32.totalorder %s707_s17, 2  ;;  %s377_s29 = scalar_lea.sflag [#allocation4], %s376_s28 }
 0x143   : > { %p529_p3 = pnand %p928_p1, %p927_p13 }
 0x145   : > { %682 = dma.done.wait (!%p529_p3), %s377_s29, 32  }
 0x146   : > { %684 = vsyncadd (!%p529_p3), %s377_s29, 4294967264  ;;  %s19_s17 = sadd.s32 1, %s707_s17   ;;  %s929_s12 = smov %s691_s13 }
 0x147   : > { %p16_p4 = scmp.ge.s32.totalorder %s19_s17, 4   ;;  %s930_s13 = smov %s695_s14 }
 0x148   : > { %s931_s14 = smov %s792_s26  ;;  %s932_s15 = smov %s703_s16 }
 0x149   : > { %s933_s16 = smov %s935_s20  ;;  %18 = sbr.rel (!%p16_p4) target bundleno = 6 (0x6), region = 83 }
 0x150   :  { %382 = vsyncpa [#allocation3], 1 }
 0x151   :  { %384 = vsyncpa [#allocation3 + $0x1], 1 }
 0x152   :  { %385 = vsyncpa [#allocation4], 1 }
 0x153   :  { %387 = vsyncpa [#allocation4 + $0x1], 1 }

</bundles_post_ra>
